<compile_context>
chip_gen: v5e
topology: v5e:2x2
jax: 0.10.0
libtpu: 0.0.40
codegen_flags: <defaults>
</compile_context>

<pallas_src>
import jax
import jax.numpy as jnp
from jax.experimental import pallas as pl
from jax.experimental.pallas import tpu as pltpu

IN_F, H1_F, H2_F, OUT_F = 784, 128, 64, 10        # logical (PyTorch) sizes
H1_PAD, H2_PAD, OUT_PAD = 128, 128, 128           # lane-padded hidden/out sizes
TB_MAX = 1024                                     # max batch tile (rows)


def _round_up(x, m):
    return ((x + m - 1) // m) * m


def mlp_kernel(x_ref, w1_ref, b1_ref, w2_ref, b2_ref, w3_ref, b3_ref, o_ref):
    # x: (TB, 784) f32; weights bf16 (lane-padded); biases f32; out (TB, 128) f32.
    x = x_ref[...].astype(jnp.bfloat16)           # in-kernel cast (VPU slack)

    # fc1 + ReLU -> (TB, 128), f32 accumulate on the MXU
    h1 = jnp.dot(x, w1_ref[...], preferred_element_type=jnp.float32) + b1_ref[...]
    h1 = jnp.maximum(h1, 0.0)

    # fc2 + ReLU -> (TB, 128); padded output columns (>=64) come out exactly 0
    h2 = jnp.dot(h1.astype(jnp.bfloat16), w2_ref[...],
                 preferred_element_type=jnp.float32) + b2_ref[...]
    h2 = jnp.maximum(h2, 0.0)

    # fc3 -> (TB, 128) logits
    logits = jnp.dot(h2.astype(jnp.bfloat16), w3_ref[...],
                     preferred_element_type=jnp.float32) + b3_ref[...]

    # mask padded logit columns to -inf so they don't dilute the softmax
    col = jax.lax.broadcasted_iota(jnp.int32, logits.shape, 1)
    logits = jnp.where(col < OUT_F, logits, -jnp.inf)

    # numerically stable softmax over the last axis (padded cols -> exactly 0)
    m = jnp.max(logits, axis=-1, keepdims=True)
    e = jnp.exp(logits - m)
    s = jnp.sum(e, axis=-1, keepdims=True)
    o_ref[...] = e * pl.reciprocal(s, approx=False)


def prepare_params(params):
    """One-time padding / bf16 conversion of the model parameters.

    Call once per model; the result is reused by every net_forward call so the
    per-call pad/convert XLA kernels (and their HBM writes) disappear.
    """
    w1, b1, w2, b2, w3, b3 = params
    w1_p = w1.astype(jnp.bfloat16)                                       # (784,128)
    b1_p = b1.reshape(1, H1_F).astype(jnp.float32)                       # (1,128)
    w2_p = (jnp.zeros((H1_F, H2_PAD), jnp.float32)
            .at[:, :H2_F].set(w2).astype(jnp.bfloat16))                  # (128,128)
    b2_p = jnp.zeros((1, H2_PAD), jnp.float32).at[:, :H2_F].set(b2.reshape(1, -1))
    w3_p = (jnp.zeros((H2_PAD, OUT_PAD), jnp.float32)
            .at[:H2_F, :OUT_F].set(w3).astype(jnp.bfloat16))             # (128,128)
    b3_p = jnp.zeros((1, OUT_PAD), jnp.float32).at[:, :OUT_F].set(b3.reshape(1, -1))
    return (w1_p, b1_p, w2_p, b2_p, w3_p, b3_p)


def net_forward(x_nchw, prepped_params):
    """x_nchw: (B, 1, 28, 28) float32 -> softmax probs (B, 10) float32."""
    w1_p, b1_p, w2_p, b2_p, w3_p, b3_p = prepped_params
    B = x_nchw.shape[0]
    x_flat = x_nchw.reshape(B, IN_F).astype(jnp.float32)   # torch.flatten(x, 1)

    # batch only padded to a multiple of 8 (sublane), and only if needed —
    # never to a multiple of TB, so no ~2x padding waste for unlucky B.
    B8 = _round_up(B, 8)
    if B8 != B:
        x_flat = jnp.pad(x_flat, ((0, B8 - B), (0, 0)))

    # batch tile: large (fewer grid-step overheads / weight revisits) but with
    # >=2 grid steps whenever possible so v7x's 2 TensorCores both get work.
    TB = min(TB_MAX, max(16, _round_up(pl.cdiv(B8, 2), 16)))
    TB = min(TB, B8)
    grid = (pl.cdiv(B8, TB),)

    # VMEM working set: double-buffered x/out tiles + resident weights + temps.
    weight_bytes = (w1_p.size + w2_p.size + w3_p.size) * 2 \
                   + (b1_p.size + b2_p.size + b3_p.size) * 4
    vmem_bytes = (2 * TB * IN_F * 4          # x tiles (f32, double-buffered)
                  + 2 * TB * OUT_PAD * 4     # out tiles
                  + 2 * weight_bytes         # resident weights (+buffer slack)
                  + 4 * TB * H1_PAD * 4)     # h1/h2/logits/exp temporaries
    vmem_limit = int(min(56 * 1024 * 1024,
                         _round_up(vmem_bytes + (4 << 20), 1 << 20)))

    flops = 2 * B8 * (IN_F * H1_PAD + H1_PAD * H2_PAD + H2_PAD * OUT_PAD)
    bytes_accessed = (x_flat.size * 4 + weight_bytes + B8 * OUT_PAD * 4)

    resident = lambda shape: pl.BlockSpec(shape, lambda i: (0, 0))

    out = pl.pallas_call(
        mlp_kernel,
        out_shape=jax.ShapeDtypeStruct((B8, OUT_PAD), jnp.float32),
        grid_spec=pltpu.PrefetchScalarGridSpec(
            num_scalar_prefetch=0,
            grid=grid,
            in_specs=[
                pl.BlockSpec((TB, IN_F), lambda i: (i, 0)),   # x tile, pipelined
                resident((IN_F, H1_PAD)),                     # w1 (VMEM-resident)
                resident((1, H1_PAD)),                        # b1
                resident((H1_PAD, H2_PAD)),                   # w2
                resident((1, H2_PAD)),                        # b2
                resident((H2_PAD, OUT_PAD)),                  # w3
                resident((1, OUT_PAD)),                       # b3
            ],
            out_specs=pl.BlockSpec((TB, OUT_PAD), lambda i: (i, 0)),
        ),
        compiler_params=pltpu.CompilerParams(
            dimension_semantics=("parallel",),
            vmem_limit_bytes=vmem_limit,
        ),
        cost_estimate=pl.CostEstimate(
            flops=flops,
            transcendentals=B8 * OUT_PAD,
            bytes_accessed=int(bytes_accessed),
        ),
    )(x_flat, w1_p, b1_p, w2_p, b2_p, w3_p, b3_p)

    return out[:B, :OUT_F]


def init_params(key):
    """Deterministic synthetic parameters (shapes from Net.__init__)."""
    k1, k2, k3, k4, k5, k6 = jax.random.split(key, 6)
    # weights stored as (in, out) = transpose of nn.Linear's (out, in)
    w1 = jax.random.normal(k1, (IN_F, H1_F), jnp.float32) * 0.05
    b1 = jax.random.normal(k2, (1, H1_F), jnp.float32) * 0.01
    w2 = jax.random.normal(k3, (H1_F, H2_F), jnp.float32) * 0.05
    b2 = jax.random.normal(k4, (1, H2_F), jnp.float32) * 0.01
    w3 = jax.random.normal(k5, (H2_F, OUT_F), jnp.float32) * 0.05
    b3 = jax.random.normal(k6, (1, OUT_F), jnp.float32) * 0.01
    return (w1, b1, w2, b2, w3, b3)


if __name__ == "__main__":
    key = jax.random.PRNGKey(0)
    kx, kp = jax.random.split(key)

    B = 8
    x = jax.random.normal(kx, (B, 1, 28, 28), jnp.float32)  # NCHW, like PyTorch
    params = init_params(kp)
    prepped = prepare_params(params)        # one-time pad / bf16 conversion

    probs = net_forward(x, prepped)
    probs = jax.block_until_ready(probs)

    # plain-JAX f32 reference (kernel uses bf16 matmul operands -> loose atol)
    w1, b1, w2, b2, w3, b3 = params
    xf = x.reshape(B, -1)
    h1 = jnp.maximum(xf @ w1 + b1, 0.0)
    h2 = jnp.maximum(h1 @ w2 + b2, 0.0)
    lg = h2 @ w3 + b3
    ref = jax.nn.softmax(lg, axis=-1)

    assert probs.shape == (B, OUT_F)
    assert jnp.allclose(probs, ref, atol=2e-2)
    assert jnp.allclose(jnp.sum(probs, axis=-1), 1.0, atol=1e-3)

    print("KERNEL_OK")
</pallas_src>

<mosaic_0001>
module attributes {stable_mosaic.version = 11 : i64} {
  func.func @mlp_kernel(%arg0: i32, %arg1: memref<8x784xf32, #tpu.memory_space<vmem>>, %arg2: memref<784x128xbf16, #tpu.memory_space<vmem>>, %arg3: memref<1x128xf32, #tpu.memory_space<vmem>>, %arg4: memref<128x128xbf16, #tpu.memory_space<vmem>>, %arg5: memref<1x128xf32, #tpu.memory_space<vmem>>, %arg6: memref<128x128xbf16, #tpu.memory_space<vmem>>, %arg7: memref<1x128xf32, #tpu.memory_space<vmem>>, %arg8: memref<8x128xf32, #tpu.memory_space<vmem>>) attributes {dimension_semantics = [#tpu.dimension_semantics<parallel>], iteration_bounds = array<i64: 1>, scalar_prefetch = 0 : i64, scratch_operands = 0 : i64, tpu.core_type = #tpu.core_type<tc>, window_params = [{transform_indices = @transform_0, window_bounds = array<i64: 8, 784>}, {pipeline_mode = #tpu.pipeline_mode<synchronous>, transform_indices = @transform_1, window_bounds = array<i64: 784, 128>}, {pipeline_mode = #tpu.pipeline_mode<synchronous>, transform_indices = @transform_2, window_bounds = array<i64: 1, 128>}, {pipeline_mode = #tpu.pipeline_mode<synchronous>, transform_indices = @transform_3, window_bounds = array<i64: 128, 128>}, {pipeline_mode = #tpu.pipeline_mode<synchronous>, transform_indices = @transform_4, window_bounds = array<i64: 1, 128>}, {pipeline_mode = #tpu.pipeline_mode<synchronous>, transform_indices = @transform_5, window_bounds = array<i64: 128, 128>}, {pipeline_mode = #tpu.pipeline_mode<synchronous>, transform_indices = @transform_6, window_bounds = array<i64: 1, 128>}, {transform_indices = @transform_7, window_bounds = array<i64: 8, 128>}]} {
    %c0 = arith.constant 0 : index
    %c0_0 = arith.constant 0 : index
    %0 = vector.load %arg1[%c0, %c0_0] : memref<8x784xf32, #tpu.memory_space<vmem>>, vector<8x784xf32>
    %1 = arith.truncf %0 : vector<8x784xf32> to vector<8x784xbf16>
    %c0_1 = arith.constant 0 : index
    %c0_2 = arith.constant 0 : index
    %2 = vector.load %arg2[%c0_1, %c0_2] : memref<784x128xbf16, #tpu.memory_space<vmem>>, vector<784x128xbf16>
    %cst = arith.constant dense<0.000000e+00> : vector<8x128xf32>
    %3 = tpu.matmul %1, %2, %cst {dimension_numbers = #tpu.dot_dimension_numbers<[1], [0], [0], [1], [0, 0, 1, 1], [], []>} : vector<8x784xbf16>, vector<784x128xbf16>, vector<8x128xf32> -> vector<8x128xf32>
    %c0_3 = arith.constant 0 : index
    %c0_4 = arith.constant 0 : index
    %4 = vector.load %arg3[%c0_3, %c0_4] : memref<1x128xf32, #tpu.memory_space<vmem>>, vector<1x128xf32>
    %5 = vector.broadcast %4 : vector<1x128xf32> to vector<8x128xf32>
    %6 = arith.addf %3, %5 : vector<8x128xf32>
    %cst_5 = arith.constant 0.000000e+00 : f32
    %7 = vector.broadcast %cst_5 : f32 to vector<8x128xf32>
    %8 = arith.maximumf %6, %7 : vector<8x128xf32>
    %9 = arith.truncf %8 : vector<8x128xf32> to vector<8x128xbf16>
    %c0_6 = arith.constant 0 : index
    %c0_7 = arith.constant 0 : index
    %10 = vector.load %arg4[%c0_6, %c0_7] : memref<128x128xbf16, #tpu.memory_space<vmem>>, vector<128x128xbf16>
    %cst_8 = arith.constant dense<0.000000e+00> : vector<8x128xf32>
    %11 = tpu.matmul %9, %10, %cst_8 {dimension_numbers = #tpu.dot_dimension_numbers<[1], [0], [0], [1], [0, 0, 1, 1], [], []>} : vector<8x128xbf16>, vector<128x128xbf16>, vector<8x128xf32> -> vector<8x128xf32>
    %c0_9 = arith.constant 0 : index
    %c0_10 = arith.constant 0 : index
    %12 = vector.load %arg5[%c0_9, %c0_10] : memref<1x128xf32, #tpu.memory_space<vmem>>, vector<1x128xf32>
    %13 = vector.broadcast %12 : vector<1x128xf32> to vector<8x128xf32>
    %14 = arith.addf %11, %13 : vector<8x128xf32>
    %cst_11 = arith.constant 0.000000e+00 : f32
    %15 = vector.broadcast %cst_11 : f32 to vector<8x128xf32>
    %16 = arith.maximumf %14, %15 : vector<8x128xf32>
    %17 = arith.truncf %16 : vector<8x128xf32> to vector<8x128xbf16>
    %c0_12 = arith.constant 0 : index
    %c0_13 = arith.constant 0 : index
    %18 = vector.load %arg6[%c0_12, %c0_13] : memref<128x128xbf16, #tpu.memory_space<vmem>>, vector<128x128xbf16>
    %cst_14 = arith.constant dense<0.000000e+00> : vector<8x128xf32>
    %19 = tpu.matmul %17, %18, %cst_14 {dimension_numbers = #tpu.dot_dimension_numbers<[1], [0], [0], [1], [0, 0, 1, 1], [], []>} : vector<8x128xbf16>, vector<128x128xbf16>, vector<8x128xf32> -> vector<8x128xf32>
    %c0_15 = arith.constant 0 : index
    %c0_16 = arith.constant 0 : index
    %20 = vector.load %arg7[%c0_15, %c0_16] : memref<1x128xf32, #tpu.memory_space<vmem>>, vector<1x128xf32>
    %21 = vector.broadcast %20 : vector<1x128xf32> to vector<8x128xf32>
    %22 = arith.addf %19, %21 : vector<8x128xf32>
    %23 = tpu.iota {dimensions = array<i32: 1>} : vector<8x128xi32>
    %c10_i32 = arith.constant 10 : i32
    %24 = vector.broadcast %c10_i32 : i32 to vector<8x128xi32>
    %25 = arith.cmpi slt, %23, %24 : vector<8x128xi32>
    %cst_17 = arith.constant 0xFF800000 : f32
    %26 = vector.broadcast %cst_17 : f32 to vector<8x128xf32>
    %27 = arith.select %25, %22, %26 : vector<8x128xi1>, vector<8x128xf32>
    %cst_18 = arith.constant dense<0xFF800000> : vector<8xf32>
    %28 = vector.multi_reduction <maximumf>, %27, %cst_18 [1] : vector<8x128xf32> to vector<8xf32>
    %29 = vector.shape_cast %28 : vector<8xf32> to vector<8x1xf32>
    %30 = vector.broadcast %29 : vector<8x1xf32> to vector<8x128xf32>
    %31 = arith.subf %27, %30 : vector<8x128xf32>
    %32 = math.exp %31 : vector<8x128xf32>
    %cst_19 = arith.constant dense<0.000000e+00> : vector<8xf32>
    %33 = vector.multi_reduction <add>, %32, %cst_19 [1] : vector<8x128xf32> to vector<8xf32>
    %34 = vector.shape_cast %33 : vector<8xf32> to vector<8x1xf32>
    %35 = tpu.reciprocal %34 : vector<8x1xf32> -> vector<8x1xf32>
    %36 = vector.broadcast %35 : vector<8x1xf32> to vector<8x128xf32>
    %37 = arith.mulf %32, %36 : vector<8x128xf32>
    %c0_20 = arith.constant 0 : index
    %c0_21 = arith.constant 0 : index
    %38 = vector.load %arg8[%c0_20, %c0_21] : memref<8x128xf32, #tpu.memory_space<vmem>>, vector<8x128xf32>
    tpu.vector_store %arg8[%c0_20, %c0_21], %37 {strides = array<i32>} : memref<8x128xf32, #tpu.memory_space<vmem>>, vector<8x128xf32>,
    return
  }
  func.func @transform_0(%arg0: i32) -> (i32, i32) {
    %c0_i32 = arith.constant 0 : i32
    %c0_i32_0 = arith.constant 0 : i32
    return %arg0, %c0_i32 : i32, i32
  }
  func.func @transform_1(%arg0: i32) -> (i32, i32) {
    %c0_i32 = arith.constant 0 : i32
    %c0_i32_0 = arith.constant 0 : i32
    %c0_i32_1 = arith.constant 0 : i32
    return %c0_i32, %c0_i32_0 : i32, i32
  }
  func.func @transform_2(%arg0: i32) -> (i32, i32) {
    %c0_i32 = arith.constant 0 : i32
    %c0_i32_0 = arith.constant 0 : i32
    %c0_i32_1 = arith.constant 0 : i32
    return %c0_i32, %c0_i32_0 : i32, i32
  }
  func.func @transform_3(%arg0: i32) -> (i32, i32) {
    %c0_i32 = arith.constant 0 : i32
    %c0_i32_0 = arith.constant 0 : i32
    %c0_i32_1 = arith.constant 0 : i32
    return %c0_i32, %c0_i32_0 : i32, i32
  }
  func.func @transform_4(%arg0: i32) -> (i32, i32) {
    %c0_i32 = arith.constant 0 : i32
    %c0_i32_0 = arith.constant 0 : i32
    %c0_i32_1 = arith.constant 0 : i32
    return %c0_i32, %c0_i32_0 : i32, i32
  }
  func.func @transform_5(%arg0: i32) -> (i32, i32) {
    %c0_i32 = arith.constant 0 : i32
    %c0_i32_0 = arith.constant 0 : i32
    %c0_i32_1 = arith.constant 0 : i32
    return %c0_i32, %c0_i32_0 : i32, i32
  }
  func.func @transform_6(%arg0: i32) -> (i32, i32) {
    %c0_i32 = arith.constant 0 : i32
    %c0_i32_0 = arith.constant 0 : i32
    %c0_i32_1 = arith.constant 0 : i32
    return %c0_i32, %c0_i32_0 : i32, i32
  }
  func.func @transform_7(%arg0: i32) -> (i32, i32) {
    %c0_i32 = arith.constant 0 : i32
    %c0_i32_0 = arith.constant 0 : i32
    return %arg0, %c0_i32 : i32, i32
  }
}

</mosaic_0001>

<bundles_post_ra>
// kernel: tpu_custom_call.1
= control target key start
LH: loop header
LB: loop body
LE: loop exit
PB: predicated region body
PF: predicated region fallthrough
CT: control target
= control target key end

     0   :  { %12 = vsyncpa [#allocation3], 0  ;;  %s1345_s0 = inlined_call_operand.hbm [shape: f32[8,784], index: 0, kind: input, shape index: {}]   ;;  %s1346_s1 = inlined_call_operand.hbm [shape: bf16[784,128], index: 1, kind: input, shape index: {}]   ;;  %s1347_s2 = inlined_call_operand.vmem [shape: f32[1,128], index: 2, kind: input, shape index: {}]   ;;  %s1348_s3 = inlined_call_operand.hbm [shape: bf16[128,128], index: 3, kind: input, shape index: {}]   ;;  %s1349_s4 = inlined_call_operand.vmem [shape: f32[1,128], index: 4, kind: input, shape index: {}]   ;;  %s1350_s5 = inlined_call_operand.hbm [shape: bf16[128,128], index: 5, kind: input, shape index: {}]   ;;  %s1351_s6 = inlined_call_operand.vmem [shape: f32[1,128], index: 6, kind: input, shape index: {}]   ;;  %s1352_s7 = inlined_call_operand.hbm [shape: f32[8,128], index: 7, kind: output, shape index: {}]  }
   0x1   :  { %13 = vsyncpa [#allocation6], 0 }
   0x2   :  { %14 = vsyncpa [#allocation9], 0  ;;  %s31_s26 = sshll.u32 %s1346_s1, 4  ;;  %s32_s26 = int_to_ptr.hbm [resolvable:$true] %s31_s26 }
   0x3   :  { %15 = vsyncpa [#allocation4], 0  ;;  %s1274_s27 = smov [#allocation5]   ;;  %s21_s8 = sshll.u32 %s1345_s0, 4  ;;  %s22_s8 = int_to_ptr.hbm [resolvable:$true] %s21_s8 }
   0x4   :  { %s33_s28 = sshll.u32 %s1274_s27, 4  ;;  %s1275_s9 = smov 64   ;;  %s34_s28 = int_to_ptr.vmem [resolvable:$true] %s33_s28 }
   0x5   :  { %s1276_s10 = smov 4   ;;  %s1277_s11 = smov [#allocation2]  }
   0x6   :  { %39 = dma.hbm_to_vmem [thread:$0]  %s32_s26, 6272, %s34_s28, [#allocation6], %s1275_s9, %s1275_s9, %s1276_s10  }
   0x7   :  { %s23_s12 = sshll.u32 %s1277_s11, 4  ;;  %s46_s15 = sshll.u32 %s1348_s3, 4  ;;  %s24_s12 = int_to_ptr.vmem [resolvable:$true] %s23_s12  ;;  %s47_s15 = int_to_ptr.hbm [resolvable:$true] %s46_s15 }
   0x8   :  { %26 = dma.hbm_to_vmem [thread:$0]  %s22_s8, 896, %s24_s12, [#allocation3]  }
   0x9   :  { %s61_s17 = sshll.u32 %s1350_s5, 4  ;;  %s1278_s18 = smov [#allocation7]   ;;  %s62_s17 = int_to_ptr.hbm [resolvable:$true] %s61_s17 }
   0xa   :  { %s48_s19 = sshll.u32 %s1278_s18, 4  ;;  %s1279_s0 = smov [#allocation8]   ;;  %s49_s19 = int_to_ptr.vmem [resolvable:$true] %s48_s19 }
   0xb   :  { %54 = dma.hbm_to_vmem [thread:$0]  %s47_s15, 1024, %s49_s19, [#allocation6], %s1275_s9, %s1275_s9, %s1276_s10  }
   0xc   :  { %s63_s20 = sshll.u32 %s1279_s0, 4  ;;  %s64_s20 = int_to_ptr.vmem [resolvable:$true] %s63_s20 }
   0xd   :  { %69 = dma.hbm_to_vmem [thread:$0]  %s62_s17, 1024, %s64_s20, [#allocation9], %s1275_s9, %s1275_s9, %s1276_s10  }
   0xe   :  { %1266 = dma.done.wait [#allocation3], 896  }
   0xf   :  { %1267 = vsyncadd [#allocation3], 4294966400 }
  0x10   :  { %1268 = dma.done.wait [#allocation6], 7296  }
  0x11   :  { %1269 = vsyncadd [#allocation6], 4294960000 }
  0x12   :  { %1270 = dma.done.wait [#allocation9], 1024  }
  0x13   :  { %1271 = vsyncadd [#allocation9], 4294966272  ;;  %v1074_v0 = vld [vmem:[#allocation5 + $0x38] sm:$0xff]  ;;  %v1073_v3 = vld [vmem:[#allocation5 + $0x30] sm:$0xff]  ;;  %vm499_vm0 = vcmask 130048   ;;  %s794_s26 = sshll.u32 %s1352_s7, 4  ;;  %s795_s26 = int_to_ptr.hbm [resolvable:$true] %s794_s26 }
  0x14   :  { %v1082_v1 = vld [vmem:[#allocation5 + $0x78] sm:$0xff]  ;;  %503 = vmatpush.bf16.msra.mxu0 %v1074_v0  ;;  %v1081_v4 = vld [vmem:[#allocation5 + $0x70] sm:$0xff]  ;;  %v1072_v8 = vld [vmem:[#allocation5 + $0x28] sm:$0xff] }
  0x15   :  { %v1090_v2 = vld [vmem:[#allocation5 + $0xb8] sm:$0xff]  ;;  %516 = vmatpush.bf16.msra.mxu1 %v1082_v1  ;;  %v1089_v5 = vld [vmem:[#allocation5 + $0xb0] sm:$0xff]  ;;  %v1080_v9 = vld [vmem:[#allocation5 + $0x68] sm:$0xff] }
  0x16   :  { %529 = vmatpush.bf16.msra.mxu2 %v1090_v2  ;;  %v1098_v6 = vld [vmem:[#allocation5 + $0xf8] sm:$0xff]  ;;  %v1097_v7 = vld [vmem:[#allocation5 + $0xf0] sm:$0xff]  ;;  %v1088_v10 = vld [vmem:[#allocation5 + $0xa8] sm:$0xff] }
  0x17   :  { %542 = vmatpush.bf16.msra.mxu3 %v1098_v6  ;;  %v1096_v11 = vld [vmem:[#allocation5 + $0xe8] sm:$0xff]  ;;  %v1071_v12 = vld [vmem:[#allocation5 + $0x20] sm:$0xff]  ;;  %v1070_v16 = vld [vmem:[#allocation5 + $0x18] sm:$0xff] }
  0x18   :  { %504 = vmatpush.bf16.msra.mxu0 %v1073_v3  ;;  %v1079_v13 = vld [vmem:[#allocation5 + $0x60] sm:$0xff]  ;;  %v1078_v17 = vld [vmem:[#allocation5 + $0x58] sm:$0xff]  ;;  %v1069_v20 = vld [vmem:[#allocation5 + $0x10] sm:$0xff] }
  0x19   :  { %517 = vmatpush.bf16.msra.mxu1 %v1081_v4  ;;  %v1087_v14 = vld [vmem:[#allocation5 + $0xa0] sm:$0xff]  ;;  %v1086_v18 = vld [vmem:[#allocation5 + $0x98] sm:$0xff]  ;;  %v1077_v21 = vld [vmem:[#allocation5 + $0x50] sm:$0xff] }
  0x1a   :  { %530 = vmatpush.bf16.msra.mxu2 %v1089_v5  ;;  %v1095_v15 = vld [vmem:[#allocation5 + $0xe0] sm:$0xff]  ;;  %v1094_v19 = vld [vmem:[#allocation5 + $0xd8] sm:$0xff]  ;;  %v1085_v22 = vld [vmem:[#allocation5 + $0x90] sm:$0xff] }
  0x1b   :  { %543 = vmatpush.bf16.msra.mxu3 %v1097_v7  ;;  %v1093_v23 = vld [vmem:[#allocation5 + $0xd0] sm:$0xff]  ;;  %v1068_v24 = vld [vmem:[#allocation5 + $0x8] sm:$0xff]  ;;  %v1067_v27 = vld [vmem:[#allocation5] sm:$0xff] }
  0x1c   :  { %505 = vmatpush.bf16.msra.mxu0 %v1072_v8  ;;  %v1076_v25 = vld [vmem:[#allocation5 + $0x48] sm:$0xff]  ;;  %v1075_v29 = vld [vmem:[#allocation5 + $0x40] sm:$0xff]  ;;  %v90_v31 = vld [vmem:[#allocation2 + $0x8] sm:$0xff] }
  0x1d   :  { %518 = vmatpush.bf16.msra.mxu1 %v1080_v9  ;;  %v1084_v26 = vld [vmem:[#allocation5 + $0x88] sm:$0xff]  ;;  %v1106_v32 = vld [vmem:[#allocation5 + $0x138] sm:$0xff]  ;;  %v1083_v34 = vld [vmem:[#allocation5 + $0x80] sm:$0xff]  ;;  %v97_v37 = vpack.c.bf16 %v90_v31, %v90_v31 }
  0x1e   :  { %531 = vmatpush.bf16.msra.mxu2 %v1088_v10  ;;  %v1092_v28 = vld [vmem:[#allocation5 + $0xc8] sm:$0xff]  ;;  %v1114_v33 = vld [vmem:[#allocation5 + $0x178] sm:$0xff]  ;;  %v1091_v38 = vld [vmem:[#allocation5 + $0xc0] sm:$0xff] }
  0x1f   :  { %544 = vmatpush.bf16.msra.mxu3 %v1096_v11  ;;  %v89_v30 = vld [vmem:[#allocation2] sm:$0xff]  ;;  %v91_v35 = vld [vmem:[#allocation2 + $0x10] sm:$0xff]  ;;  %v1115_v39 = vld [vmem:[#allocation5 + $0x180] sm:$0xff] }
  0x20   :  { %506 = vmatpush.bf16.msra.mxu0 %v1071_v12  ;;  %v96_v36 = vpack.c.bf16 %v89_v30, %v89_v30  ;;  %v92_v40 = vld [vmem:[#allocation2 + $0x18] sm:$0xff]  ;;  %v1105_v41 = vld [vmem:[#allocation5 + $0x130] sm:$0xff]  ;;  %v98_v43 = vpack.c.bf16 %v91_v35, %v91_v35  ;;  %v1104_v45 = vld [vmem:[#allocation5 + $0x128] sm:$0xff] }
  0x21   :  { %519 = vmatpush.bf16.msra.mxu1 %v1079_v13  ;;  %v1113_v42 = vld [vmem:[#allocation5 + $0x170] sm:$0xff]  ;;  %v99_v44 = vpack.c.bf16 %v92_v40, %v92_v40  ;;  %v1112_v46 = vld [vmem:[#allocation5 + $0x168] sm:$0xff]  ;;  %v1103_v47 = vld [vmem:[#allocation5 + $0x120] sm:$0xff] }
  0x22   :  { %532 = vmatpush.bf16.msra.mxu2 %v1087_v14  ;;  %v1111_v48 = vld [vmem:[#allocation5 + $0x160] sm:$0xff]  ;;  %v1102_v49 = vld [vmem:[#allocation5 + $0x118] sm:$0xff]  ;;  %v1101_v52 = vld [vmem:[#allocation5 + $0x110] sm:$0xff] }
  0x23   :  { %545 = vmatpush.bf16.msra.mxu3 %v1095_v15  ;;  %v1110_v50 = vld [vmem:[#allocation5 + $0x158] sm:$0xff]  ;;  %v1109_v53 = vld [vmem:[#allocation5 + $0x150] sm:$0xff]  ;;  %v1100_v55 = vld [vmem:[#allocation5 + $0x108] sm:$0xff] }
  0x24   :  { %507 = vmatpush.bf16.msra.mxu0 %v1070_v16  ;;  %v95_v51 = vld [vmem:[#allocation2 + $0x30] sm:$0xff]  ;;  %v1108_v56 = vld [vmem:[#allocation5 + $0x148] sm:$0xff]  ;;  %v1099_v57 = vld [vmem:[#allocation5 + $0x100] sm:$0xff] }
  0x25   :  { %520 = vmatpush.bf16.msra.mxu1 %v1078_v17  ;;  %v102_v54 = vpack.c.bf16 %v95_v51, %v95_v51  ;;  %v1107_v58 = vld [vmem:[#allocation5 + $0x140] sm:$0xff]  ;;  %v93_v59 = vld [vmem:[#allocation2 + $0x20] sm:$0xff]  ;;  %v94_v60 = vld [vmem:[#allocation2 + $0x28] sm:$0xff] }
  0x26   :  { %533 = vmatpush.bf16.msra.mxu2 %v1086_v18  ;;  %v100_v61 = vpack.c.bf16 %v93_v59, %v93_v59  ;;  %v101_v62 = vpack.c.bf16 %v94_v60, %v94_v60  ;;  %v1123_v63 = vld [vmem:[#allocation7 + $0x38] sm:$0xff]  ;;  %v1122_v0 = vld [vmem:[#allocation7 + $0x30] sm:$0xff]  ;;  %v1121_v1 = vld [vmem:[#allocation7 + $0x28] sm:$0xff] }
  0x27   :  { %546 = vmatpush.bf16.msra.mxu3 %v1094_v19  ;;  %v1120_v2 = vld [vmem:[#allocation7 + $0x20] sm:$0xff]  ;;  %v1119_v3 = vld [vmem:[#allocation7 + $0x18] sm:$0xff]  ;;  %v1118_v4 = vld [vmem:[#allocation7 + $0x10] sm:$0xff] }
  0x28   :  { %508 = vmatpush.bf16.msra.mxu0 %v1069_v20  ;;  %v1117_v5 = vld [vmem:[#allocation7 + $0x8] sm:$0xff]  ;;  %v1116_v8 = vld [vmem:[#allocation7] sm:$0xff]  ;;  %v1131_v11 = vld [vmem:[#allocation8 + $0x38] sm:$0xff] }
  0x29   :  { %521 = vmatpush.bf16.msra.mxu1 %v1077_v21  ;;  %v1130_v14 = vld [vmem:[#allocation8 + $0x30] sm:$0xff]  ;;  %v1139_v15 = vld [vmem:[%s1347_s2] ss:$0 sm:$0xff]  ;;  %v1129_v16 = vld [vmem:[#allocation8 + $0x28] sm:$0xff] }
  0x2a   :  { %534 = vmatpush.bf16.msra.mxu2 %v1085_v22  ;;  %v1128_v20 = vld [vmem:[#allocation8 + $0x20] sm:$0xff]  ;;  %v1127_v22 = vld [vmem:[#allocation8 + $0x18] sm:$0xff] }
  0x2b   :  { %547 = vmatpush.bf16.msra.mxu3 %v1093_v23 }
  0x2c   :  { %509 = vmatpush.bf16.msra.mxu0 %v1068_v24 }
  0x2d   :  { %522 = vmatpush.bf16.msra.mxu1 %v1076_v25  ;;  %v1126_v25 = vld [vmem:[#allocation8 + $0x10] sm:$0xff] }
  0x2e   :  { %535 = vmatpush.bf16.msra.mxu2 %v1084_v26 }
  0x2f   :  { %548 = vmatpush.bf16.msra.mxu3 %v1092_v28 }
  0x30   :  { %510 = vmatpush.bf16.msra.mxu0 %v1067_v27 }
  0x31   :  { %523 = vmatpush.bf16.msra.mxu1 %v1075_v29 }
  0x32   :  { %536 = vmatpush.bf16.msra.mxu2 %v1083_v34 }
  0x33   :  { %511 = vmatmul.bf16.vlgmr.msra.gmra.mxu0 %v96_v36  ;;  %549 = vmatpush.bf16.msra.mxu3 %v1091_v38  ;;  %v1124_v38 = vld [vmem:[#allocation8] sm:$0xff] }
  0x34   :  { %555 = vmatpush.bf16.msrb.mxu0 %v1106_v32  ;;  %524 = vmatmul.bf16.vlgmr.msra.gmra.mxu1 %v97_v37  ;;  %v1125_v37 = vld [vmem:[#allocation8 + $0x8] sm:$0xff] }
  0x35   :  { %568 = vmatpush.bf16.msrb.mxu1 %v1114_v33  ;;  %537 = vmatmul.bf16.vlgmr.msra.gmra.mxu2 %v98_v43 }
  0x36   :  { %588 = vmatpush.bf16.msrb.mxu2 %v1115_v39  ;;  %550 = vmatmul.bf16.vlgmr.msra.gmra.mxu3 %v99_v44  ;;  %v1140_v39 = vld [vmem:[%s1349_s4] ss:$0 sm:$0xff]  ;;  %s1280_s4 = smov [#allocation10]  }
  0x37   :  { %664 = vmatpush.bf16.msrb.mxu3 %v1123_v63 }
  0x38   :  { %556 = vmatpush.bf16.msrb.mxu0 %v1105_v41 }
  0x39   :  { %569 = vmatpush.bf16.msrb.mxu1 %v1113_v42 }
  0x3a   :  { %747 = vmatpush.bf16.msra.mxu2 %v1131_v11 }
  0x3b   :  { %665 = vmatpush.bf16.msrb.mxu3 %v1122_v0 }
  0x3c   :  { %557 = vmatpush.bf16.msrb.mxu0 %v1104_v45  ;;  %v760_v45 = vlaneseq }
  0x3d   :  { %570 = vmatpush.bf16.msrb.mxu1 %v1112_v46 }
  0x3e   :  { %748 = vmatpush.bf16.msra.mxu2 %v1130_v14  ;;  %v761_v46 = vand.u32 127, %v760_v45 }
  0x3f   :  { %666 = vmatpush.bf16.msrb.mxu3 %v1121_v1 }
  0x40   :  { %558 = vmatpush.bf16.msrb.mxu0 %v1103_v47  ;;  %v1141_v47 = vld [vmem:[%s1351_s6] ss:$0 sm:$0xff]  ;;  %vm762_vm1 = vcmp.lt.s32.totalorder %v761_v46, 10  ;;  %s792_s6 = sshll.u32 %s1280_s4, 4  ;;  %s793_s6 = int_to_ptr.vmem [resolvable:$true] %s792_s6 }
  0x41   :  { %571 = vmatpush.bf16.msrb.mxu1 %v1111_v48 }
  0x42   :  { %749 = vmatpush.bf16.msra.mxu2 %v1129_v16 }
  0x43   :  { %667 = vmatpush.bf16.msrb.mxu3 %v1120_v2 }
  0x44   :  { %559 = vmatpush.bf16.msrb.mxu0 %v1102_v49 }
  0x45   :  { %572 = vmatpush.bf16.msrb.mxu1 %v1110_v50  ;;  %1002 = vmatmul.msk.bf16.vlgmr.msrb.gmra.mxu2 %vm499_vm0, %v102_v54 }
  0x46   :  { %750 = vmatpush.bf16.msra.mxu2 %v1128_v20 }
  0x47   :  { %668 = vmatpush.bf16.msrb.mxu3 %v1119_v3 }
  0x48   :  { %560 = vmatpush.bf16.msrb.mxu0 %v1101_v52 }
  0x49   :  { %573 = vmatpush.bf16.msrb.mxu1 %v1109_v53 }
  0x4a   :  { %751 = vmatpush.bf16.msra.mxu2 %v1127_v22 }
  0x4b   :  { %669 = vmatpush.bf16.msrb.mxu3 %v1118_v4 }
  0x4c   :  { %561 = vmatpush.bf16.msrb.mxu0 %v1100_v55 }
  0x4d   :  { %574 = vmatpush.bf16.msrb.mxu1 %v1108_v56 }
  0x4e   :  { %752 = vmatpush.bf16.msra.mxu2 %v1126_v25 }
  0x4f   :  { %670 = vmatpush.bf16.msrb.mxu3 %v1117_v5 }
  0x50   :  { %562 = vmatpush.bf16.msrb.mxu0 %v1099_v57 }
  0x51   :  { %575 = vmatpush.bf16.msrb.mxu1 %v1107_v58 }
  0x52   :  { %753 = vmatpush.bf16.msra.mxu2 %v1125_v37 }
  0x53   :  { %563 = vmatmul.bf16.vlgmr.msrb.gmra.mxu0 %v100_v61  ;;  %671 = vmatpush.bf16.msrb.mxu3 %v1116_v8 }
  0x54   :  { %576 = vmatmul.bf16.vlgmr.msrb.gmra.mxu1 %v101_v62 }
  0x56   :  { %754 = vmatpush.bf16.msra.mxu2 %v1124_v38 }
  0xb0   :  { %v512_v6 = vpop.f32.mrf.mxu0 }
  0xb1   :  { %v525_v7 = vpop.f32.mrf.mxu1  ;;  %v513_v17 = vadd.f32 %v1139_v15, %v512_v6 }
  0xb3   :  { %v526_v21 = vadd.f32 %v525_v7, %v513_v17 }
  0xb8   :  { %v514_v9 = vpop.f32.mrf.mxu0  ;;  %v538_v12 = vpop.f32.mrf.mxu2 }
  0xb9   :  { %v527_v10 = vpop.f32.mrf.mxu1  ;;  %v551_v13 = vpop.f32.mrf.mxu3  ;;  %v539_v23 = vadd.f32 %v538_v12, %v526_v21 }
  0xbb   :  { %v552_v26 = vadd.f32 %v551_v13, %v539_v23 }
  0xc0   :  { %v540_v18 = vpop.f32.mrf.mxu2 }
  0xc1   :  { %v553_v19 = vpop.f32.mrf.mxu3 }
  0xc8   :  { %v590_v24 = vpop.f32.mrf.mxu2 }
  0xd0   :  { %v564_v27 = vpop.f32.mrf.mxu0  ;;  %v592_v31 = vpop.f32.mrf.mxu2 }
  0xd1   :  { %v577_v28 = vpop.f32.mrf.mxu1  ;;  %v565_v29 = vadd.f32 %v564_v27, %v552_v26 }
  0xd3   :  { %v578_v30 = vadd.f32 %v577_v28, %v565_v29 }
  0xd5   :  { %v591_v32 = vadd.f32 %v590_v24, %v578_v30 }
  0xd7   :  { %v594_v33 = vmax.f32 %v591_v32, 0.0 }
  0xd8   :  { %v566_v34 = vpop.f32.mrf.mxu0 }
  0xd9   :  { %v579_v35 = vpop.f32.mrf.mxu1  ;;  %v595_v36 = vpack.c.bf16 %v594_v33, %v594_v33 }
  0xdb   :  { %672 = vmatmul.bf16.vlgmr.msrb.gmra.mxu3 %v595_v36 }
 0x15e   :  { %v673_v40 = vpop.f32.mrf.mxu3 }
 0x15f   :  { %v674_v41 = vadd.f32 %v1140_v39, %v673_v40 }
 0x161   :  { %v677_v42 = vmax.f32 %v674_v41, 0.0 }
 0x163   :  { %v678_v43 = vpack.c.bf16 %v677_v42, %v677_v42 }
 0x165   :  { %755 = vmatmul.bf16.vlgmr.msra.gmra.mxu2 %v678_v43 }
 0x166   :  { %v675_v44 = vpop.f32.mrf.mxu3 }
 0x1e8   :  { %v756_v48 = vpop.f32.mrf.mxu2 }
 0x1e9   :  { %v757_v49 = vadd.f32 %v1141_v47, %v756_v48 }
 0x1eb   :  { %v763_v50 = vsel %vm762_vm1, %v757_v49, -inf }
 0x1ec   :  { %764 = vmax.xlane.f32.xlu0 %v763_v50 }
 0x1f0   :  { %v758_v51 = vpop.f32.mrf.mxu2 }
 0x25f   :  { %v765_v52 = vpop.xlane.xlu0 %764 }
 0x260   :  { %v766_v53 = vsub.f32 %v763_v50, %v765_v52 }
 0x262   :  { %v767_v54 = vmul.f32 1.442695, %v766_v53 }
 0x264   :  { %1142 = vpow2.f32 %v767_v54 }
 0x26a   :  { %v1143_v55 = vpop.eup %1142 }
 0x26b   :  { %769 = vadd.xlane.f32.xlu0 %v1143_v55 }
 0x2de   :  { %v770_v56 = vpop.xlane.xlu0 %769 }
 0x2df   :  { %1144 = vrcp.f32 %v770_v56  ;;  %v782_v60 = vand.u32 2147483648, %v770_v56  ;;  %v780_v62 = vand.u32 2147483647, %v770_v56  ;;  %vm776_vm3 = vweird.f32 %v770_v56 }
 0x2e1   :  { %v783_v0 = vor.u32 1.1754944e-38, %v782_v60  ;;  %vm781_vm5 = vcmp.eq.f32.partialorder %v780_v62, 8.507059e+37 }
 0x2e5   :  { %v1145_v57 = vpop.eup %1144 }
 0x2e6   :  { %v772_v58 = vmul.f32 %v1145_v57, %v770_v56  ;;  %vm777_vm2 = vweird.f32 %v1145_v57 }
 0x2e7   :  { %vm778_vm4 = vmor %vm776_vm3, %vm777_vm2 }
 0x2e8   :  { %v773_v59 = vsub.f32 1.0, %v772_v58 }
 0x2ea   :  { %v774_v61 = vmul.f32 %v1145_v57, %v773_v59 }
 0x2ec   :  { %v775_v63 = vadd.f32 %v1145_v57, %v774_v61 }
 0x2ee   :  { %v779_v1 = vsel %vm778_vm4, %v1145_v57, %v775_v63 }
 0x2ef   :  { %v784_v2 = vsel %vm781_vm5, %v783_v0, %v779_v1 }
 0x2f0   :  { %v785_v3 = vmul.f32 %v1143_v55, %v784_v2 }
 0x2f2   :  { %786 = vst [vmem:[#allocation10] sm:$0xff] %v785_v3 }
 0x2f3   :  { %797 = dma.vmem_to_hbm [thread:$0]  %s793_s6, 128, %s795_s26, [#allocation4]  }
 0x2f4   :  { %1272 = dma.done.wait [#allocation4], 128  }
 0x2f5   :  { %1273 = vsyncadd [#allocation4], 4294967168 }
 0x2f6   :  { %802 = vsyncpa [#allocation3], 1 }
 0x2f7   :  { %803 = vsyncpa [#allocation6], 1 }
 0x2f8   :  { %804 = vsyncpa [#allocation9], 1 }
 0x2f9   :  { %805 = vsyncpa [#allocation4], 1 }

</bundles_post_ra>
